<compile_context>
chip_gen: v7x
topology: tpu7x:2x2x1
jax: 0.10.0
libtpu: 0.0.40
codegen_flags: <defaults>
</compile_context>

<pallas_src>
import functools

import jax
import jax.numpy as jnp
from jax import lax
from jax.experimental import pallas as pl
from jax.experimental.pallas import tpu as pltpu


_HALO = 128  # lane-aligned halo so the bulk scratch store is an unmasked vst


# ----------------------------------------------------------------------------
# In-kernel helpers
# ----------------------------------------------------------------------------
def _stage_halo(halo_ref, x, L, pad):
    """Copy the cast block into the halo scratch; zero only the halo columns read."""
    halo_ref[:, _HALO:_HALO + L] = x                    # lane-aligned bulk store
    if pad > 0:
        z = jnp.zeros((x.shape[0], pad), jnp.float32)
        halo_ref[:, _HALO - pad:_HALO] = z              # left conv halo
        halo_ref[:, _HALO + L:_HALO + L + pad] = z      # right conv halo


def _tap(halo_ref, x, L, pad, k):
    """Shifted (by k - pad) view of the signal with zero padding at the edges."""
    if k == pad:
        return x                                        # unshifted: reuse loaded block
    start = _HALO - pad + k
    return halo_ref[:, start:start + L]                 # slice the REF, not a value


# ----------------------------------------------------------------------------
# Kernels
# ----------------------------------------------------------------------------
def _scoreconv_kernel(x_ref, w_ref, b_ref, o_ref, halo_ref, *, K, L, attention):
    """Single-layer ScoreConv: Conv1d(1, 1, K, padding=K//2) [+ attention]."""
    pad = K // 2
    x = x_ref[...].astype(jnp.float32)
    _stage_halo(halo_ref, x, L, pad)
    # First tap + bias folded into the accumulator init (no zeros slab).
    acc = w_ref[0] * _tap(halo_ref, x, L, pad, 0) + b_ref[0]
    for k in range(1, K):                               # K is small & static
        acc = acc + w_ref[k] * _tap(halo_ref, x, L, pad, k)
    if attention:
        acc = acc * x
    o_ref[...] = acc.astype(o_ref.dtype)


def _scoreconv_bilay_kernel(x_ref, w1_ref, b1_ref, w2_ref, b2_ref, o_ref, halo_ref,
                            *, K, L, chan, attention):
    """Two-layer ScoreConv: Conv1d(1,chan,K,pad) -> ReLU -> Conv1d(chan,1,1)."""
    pad = K // 2
    x = x_ref[...].astype(jnp.float32)
    _stage_halo(halo_ref, x, L, pad)
    # Hoist the K shifted slices out of the channel loop: each tap is loaded once
    # and fanned out to all `chan` channel accumulators.
    hs = [None] * chan
    for k in range(K):
        tap = _tap(halo_ref, x, L, pad, k)
        for c in range(chan):
            if k == 0:
                hs[c] = w1_ref[c * K] * tap + b1_ref[c]     # first tap + bias init
            else:
                hs[c] = hs[c] + w1_ref[c * K + k] * tap
    y = None
    for c in range(chan):
        yc = w2_ref[c] * jnp.maximum(hs[c], 0.0)            # ReLU + 1x1 conv
        y = yc if c == 0 else y + yc
    y = y + b2_ref[0]
    if attention:
        y = y * x
    o_ref[...] = y.astype(o_ref.dtype)


# ----------------------------------------------------------------------------
# Wrapper
# ----------------------------------------------------------------------------
def _round_up(x, m):
    return (x + m - 1) // m * m


def _pick_batch_tile(N, L, elem_bytes, n_slabs, vmem_budget_bytes):
    """Largest batch tile (multiple of 8) whose working set fits the VMEM budget,
    capped so the grid has >= ~4 steps when the batch is large enough."""
    per_row = (2 * L * elem_bytes            # input block, double-buffered
               + 2 * L * elem_bytes          # output block, double-buffered
               + (L + 2 * _HALO) * 4         # halo scratch (f32)
               + n_slabs * L * 4)            # live f32 temporaries in the kernel
    nt = max(8, int(vmem_budget_bytes // per_row) // 8 * 8)
    n8 = _round_up(N, 8)
    nt_grid = max(8, (n8 // 4) // 8 * 8)     # aim for >= 4 grid steps (megacore/pipeline)
    nt = min(nt, nt_grid)
    if nt >= N:
        return N                             # one block; block dim == full dim is legal
    return nt


def score_conv_forward(x, params, *, ker_size, bi_lay=False, attention=False,
                       vmem_budget_bytes=12 * 1024 * 1024):
    """x: (N, 1, L) -> (N, 1, L), matching ScoreConv.forward."""
    if ker_size % 2 != 1:
        raise NotImplementedError(
            "TODO(synk): even kerSize changes the PyTorch output length; odd only.")
    N, C, L = x.shape
    assert C == 1, "ScoreConv takes a single-channel score signal"
    pad = ker_size // 2
    if pad >= _HALO:
        raise NotImplementedError("kerSize must be < 257")

    x2 = x.reshape(N, L)                     # drop channel dim: free, no HBM pass
    chan = int(params["w1"].shape[0]) if bi_lay else 1
    n_slabs = (chan + 2) if bi_lay else 3
    Nt = _pick_batch_tile(N, L, x2.dtype.itemsize, n_slabs, vmem_budget_bytes)
    grid = (pl.cdiv(N, Nt),)
    # TODO(synk): signals so long that even an 8-row tile overflows VMEM would also
    #   need tiling along L with halo exchange; not needed for ScoreConv's lengths.

    x_spec = pl.BlockSpec((Nt, L), lambda i: (i, 0))
    out_spec = pl.BlockSpec((Nt, L), lambda i: (i, 0))
    smem = pl.BlockSpec(memory_space=pltpu.MemorySpace.SMEM)     # tiny weights/biases
    out_shape = jax.ShapeDtypeStruct((N, L), x2.dtype)
    scratch = [pltpu.VMEM((Nt, L + 2 * _HALO), jnp.float32)]
    cparams = pltpu.CompilerParams(dimension_semantics=("parallel",))

    if bi_lay:
        kernel = functools.partial(_scoreconv_bilay_kernel, K=ker_size, L=L,
                                   chan=chan, attention=attention)
        out = pl.pallas_call(
            kernel, out_shape=out_shape, grid=grid,
            in_specs=[x_spec, smem, smem, smem, smem],
            out_specs=out_spec, scratch_shapes=scratch,
            compiler_params=cparams,
        )(x2,
          params["w1"].reshape(-1).astype(jnp.float32),   # (chan*K,) Conv1d(1,chan,K) w
          params["b1"].reshape(-1).astype(jnp.float32),   # (chan,)
          params["w2"].reshape(-1).astype(jnp.float32),   # (chan,)   Conv1d(chan,1,1) w
          params["b2"].reshape(-1).astype(jnp.float32))   # (1,)
    else:
        kernel = functools.partial(_scoreconv_kernel, K=ker_size, L=L,
                                   attention=attention)
        out = pl.pallas_call(
            kernel, out_shape=out_shape, grid=grid,
            in_specs=[x_spec, smem, smem],
            out_specs=out_spec, scratch_shapes=scratch,
            compiler_params=cparams,
        )(x2,
          params["w"].reshape(-1).astype(jnp.float32),    # (K,) Conv1d(1,1,K) weight
          params["b"].reshape(-1).astype(jnp.float32))    # (1,)

    return out.reshape(N, 1, L)


# ----------------------------------------------------------------------------
# Pure-JAX reference (mirrors the PyTorch forward exactly) for validation.
# ----------------------------------------------------------------------------
def _reference(x, params, *, ker_size, bi_lay, attention):
    pad = ker_size // 2
    dn = ("NCH", "OIH", "NCH")
    if bi_lay:
        h = lax.conv_general_dilated(x, params["w1"], (1,), ((pad, pad),),
                                     dimension_numbers=dn)
        h = jax.nn.relu(h + params["b1"][None, :, None])
        y = lax.conv_general_dilated(h, params["w2"], (1,), ((0, 0),),
                                     dimension_numbers=dn)
        y = y + params["b2"][None, :, None]
    else:
        y = lax.conv_general_dilated(x, params["w"], (1,), ((pad, pad),),
                                     dimension_numbers=dn)
        y = y + params["b"][None, :, None]
    return y * x if attention else y


if __name__ == "__main__":
    K = 5            # kerSize
    chan = 4         # channels for the biLay path

    key = jax.random.PRNGKey(0)
    ks = jax.random.split(key, 7)
    params_single = {
        "w": jax.random.normal(ks[1], (1, 1, K), jnp.float32) * 0.3,
        "b": jax.random.normal(ks[2], (1,), jnp.float32) * 0.1,
    }
    params_bilay = {
        "w1": jax.random.normal(ks[3], (chan, 1, K), jnp.float32) * 0.3,
        "b1": jax.random.normal(ks[4], (chan,), jnp.float32) * 0.1,
        "w2": jax.random.normal(ks[5], (1, chan, 1), jnp.float32) * 0.3,
        "b2": jax.random.normal(ks[6], (1,), jnp.float32) * 0.1,
    }

    # Primary small case + a case that exercises partial batch blocks and a
    # non-128-multiple length (masked tail stores, misaligned halo taps).
    for (N, L) in ((2, 32), (10, 200)):
        x = jax.random.normal(ks[0], (N, 1, L), jnp.float32)
        for bi_lay, params in ((False, params_single), (True, params_bilay)):
            for attention in (False, True):
                out = jax.block_until_ready(
                    score_conv_forward(x, params, ker_size=K,
                                       bi_lay=bi_lay, attention=attention))
                ref = jax.block_until_ready(
                    _reference(x, params, ker_size=K,
                               bi_lay=bi_lay, attention=attention))
                assert out.shape == ref.shape, (out.shape, ref.shape)
                err = float(jnp.max(jnp.abs(out - ref)))
                assert err < 1e-4, (
                    f"N={N} L={L} biLay={bi_lay} attention={attention} "
                    f"max abs diff {err}")

    print("KERNEL_OK")
</pallas_src>

<mosaic_0001>
module attributes {stable_mosaic.version = 11 : i64} {
  func.func @_scoreconv_kernel(%arg0: i32, %arg1: memref<2x32xf32, #tpu.memory_space<vmem>>, %arg2: memref<5xf32, #tpu.memory_space<smem>>, %arg3: memref<1xf32, #tpu.memory_space<smem>>, %arg4: memref<2x32xf32, #tpu.memory_space<vmem>>, %arg5: memref<2x288xf32, #tpu.memory_space<vmem>>) attributes {dimension_semantics = [#tpu.dimension_semantics<parallel>], iteration_bounds = array<i64: 1>, scalar_prefetch = 0 : i64, scratch_operands = 1 : i64, tpu.core_type = #tpu.core_type<tc>, window_params = [{transform_indices = @transform_0, window_bounds = array<i64: 2, 32>}, {transform_indices = @transform_1, window_bounds = array<i64: 5>}, {transform_indices = @transform_2, window_bounds = array<i64: 1>}, {transform_indices = @transform_3, window_bounds = array<i64: 2, 32>}]} {
    %c0 = arith.constant 0 : index
    %c0_0 = arith.constant 0 : index
    %0 = vector.load %arg1[%c0, %c0_0] : memref<2x32xf32, #tpu.memory_space<vmem>>, vector<2x32xf32>
    %c0_1 = arith.constant 0 : index
    %c128 = arith.constant 128 : index
    %1 = vector.load %arg5[%c0_1, %c128] : memref<2x288xf32, #tpu.memory_space<vmem>>, vector<2x32xf32>
    tpu.vector_store %arg5[%c0_1, %c128], %0 {strides = array<i32>} : memref<2x288xf32, #tpu.memory_space<vmem>>, vector<2x32xf32>,
    %cst = arith.constant 0.000000e+00 : f32
    %2 = vector.broadcast %cst : f32 to vector<2x2xf32>
    %c0_2 = arith.constant 0 : index
    %c126 = arith.constant 126 : index
    %3 = vector.load %arg5[%c0_2, %c126] : memref<2x288xf32, #tpu.memory_space<vmem>>, vector<2x2xf32>
    tpu.vector_store %arg5[%c0_2, %c126], %2 {strides = array<i32>} : memref<2x288xf32, #tpu.memory_space<vmem>>, vector<2x2xf32>,
    %c0_3 = arith.constant 0 : index
    %c160 = arith.constant 160 : index
    %4 = vector.load %arg5[%c0_3, %c160] : memref<2x288xf32, #tpu.memory_space<vmem>>, vector<2x2xf32>
    tpu.vector_store %arg5[%c0_3, %c160], %2 {strides = array<i32>} : memref<2x288xf32, #tpu.memory_space<vmem>>, vector<2x2xf32>,
    %c0_4 = arith.constant 0 : index
    %5 = memref.load %arg2[%c0_4] : memref<5xf32, #tpu.memory_space<smem>>
    %c0_5 = arith.constant 0 : index
    %c126_6 = arith.constant 126 : index
    %6 = vector.load %arg5[%c0_5, %c126_6] : memref<2x288xf32, #tpu.memory_space<vmem>>, vector<2x32xf32>
    %7 = vector.broadcast %5 : f32 to vector<2x32xf32>
    %8 = arith.mulf %7, %6 : vector<2x32xf32>
    %c0_7 = arith.constant 0 : index
    %9 = memref.load %arg3[%c0_7] : memref<1xf32, #tpu.memory_space<smem>>
    %10 = vector.broadcast %9 : f32 to vector<2x32xf32>
    %11 = arith.addf %8, %10 : vector<2x32xf32>
    %c1 = arith.constant 1 : index
    %12 = memref.load %arg2[%c1] : memref<5xf32, #tpu.memory_space<smem>>
    %c0_8 = arith.constant 0 : index
    %c127 = arith.constant 127 : index
    %13 = vector.load %arg5[%c0_8, %c127] : memref<2x288xf32, #tpu.memory_space<vmem>>, vector<2x32xf32>
    %14 = vector.broadcast %12 : f32 to vector<2x32xf32>
    %15 = arith.mulf %14, %13 : vector<2x32xf32>
    %16 = arith.addf %11, %15 : vector<2x32xf32>
    %c2 = arith.constant 2 : index
    %17 = memref.load %arg2[%c2] : memref<5xf32, #tpu.memory_space<smem>>
    %18 = vector.broadcast %17 : f32 to vector<2x32xf32>
    %19 = arith.mulf %18, %0 : vector<2x32xf32>
    %20 = arith.addf %16, %19 : vector<2x32xf32>
    %c3 = arith.constant 3 : index
    %21 = memref.load %arg2[%c3] : memref<5xf32, #tpu.memory_space<smem>>
    %c0_9 = arith.constant 0 : index
    %c129 = arith.constant 129 : index
    %22 = vector.load %arg5[%c0_9, %c129] : memref<2x288xf32, #tpu.memory_space<vmem>>, vector<2x32xf32>
    %23 = vector.broadcast %21 : f32 to vector<2x32xf32>
    %24 = arith.mulf %23, %22 : vector<2x32xf32>
    %25 = arith.addf %20, %24 : vector<2x32xf32>
    %c4 = arith.constant 4 : index
    %26 = memref.load %arg2[%c4] : memref<5xf32, #tpu.memory_space<smem>>
    %c0_10 = arith.constant 0 : index
    %c130 = arith.constant 130 : index
    %27 = vector.load %arg5[%c0_10, %c130] : memref<2x288xf32, #tpu.memory_space<vmem>>, vector<2x32xf32>
    %28 = vector.broadcast %26 : f32 to vector<2x32xf32>
    %29 = arith.mulf %28, %27 : vector<2x32xf32>
    %30 = arith.addf %25, %29 : vector<2x32xf32>
    %c0_11 = arith.constant 0 : index
    %c0_12 = arith.constant 0 : index
    %31 = vector.load %arg4[%c0_11, %c0_12] : memref<2x32xf32, #tpu.memory_space<vmem>>, vector<2x32xf32>
    tpu.vector_store %arg4[%c0_11, %c0_12], %30 {strides = array<i32>} : memref<2x32xf32, #tpu.memory_space<vmem>>, vector<2x32xf32>,
    return
  }
  func.func @transform_0(%arg0: i32) -> (i32, i32) {
    %c0_i32 = arith.constant 0 : i32
    %c0_i32_0 = arith.constant 0 : i32
    return %arg0, %c0_i32 : i32, i32
  }
  func.func @transform_1(%arg0: i32) -> i32 {
    %c0_i32 = arith.constant 0 : i32
    %c0_i32_0 = arith.constant 0 : i32
    return %c0_i32 : i32
  }
  func.func @transform_2(%arg0: i32) -> i32 {
    %c0_i32 = arith.constant 0 : i32
    %c0_i32_0 = arith.constant 0 : i32
    return %c0_i32 : i32
  }
  func.func @transform_3(%arg0: i32) -> (i32, i32) {
    %c0_i32 = arith.constant 0 : i32
    %c0_i32_0 = arith.constant 0 : i32
    return %arg0, %c0_i32 : i32, i32
  }
}

</mosaic_0001>

<bundles_post_ra>
// kernel: tpu_custom_call.1
= control target key start
LH: loop header
LB: loop body
LE: loop exit
PB: predicated region body
PF: predicated region fallthrough
CT: control target
= control target key end

     0   :  { %9 = vsyncpa [#allocation6], 0  ;;  %s230_s0 = inlined_call_operand.vmem [shape: f32[2,32], index: 0, kind: input, shape index: {}]   ;;  %s231_s1 = inlined_call_operand.vmem [shape: f32[5], index: 1, kind: input, shape index: {}]   ;;  %s232_s2 = inlined_call_operand.<no memory space> [shape: f32[1], index: 2, kind: input, shape index: {}]   ;;  %s233_s3 = inlined_call_operand.hbm [shape: f32[2,32], index: 3, kind: output, shape index: {}]  }
   0x1   :  { %10 = vsyncpa [#allocation5], 0  ;;  %s19_s14 = sshll.u32 %s231_s1, 4  ;;  %s20_s14 = int_to_ptr.vmem [resolvable:$true] %s19_s14 }
   0x2   :  { %s140_s15 = scalar_lea.vmem %s20_s14, 16  ;;  %p145_p1 = scmp.lt.s32.totalorder %s20_s14, %s20_s14 }
   0x3   :  { %p141_p0 = scmp.ne.s32.totalorder %s20_s14, %s140_s15  ;;  %p146_p2 = scmp.lt.s32.totalorder %s140_s15, %s140_s15 }
   0x5   :  { %p147_p3 = por %p146_p2, %p145_p1 }
   0x7   :  { %p148_p4 = pnand %p147_p3, %p141_p0 }
   0x9   :  { %151 = shalt.err (!%p148_p4)
}
   0xa   :  { %s178_s16 = smov [#allocation4]  }
   0xb   :  { %22 = dma.vmem_to_smem %s20_s14, 16, %s178_s16, [#allocation6]  }
   0xc   :  { %174 = dma.done.wait [#allocation6], 16  }
   0xd   :  { %175 = vsyncadd [#allocation6], 4294967280 }
   0xe   :  { %28 = sfence }
   0xf   :  { %v29_v0 = vld [vmem:[%s230_s0] sm:$0x3]  ;;  %vm30_vm0 = vcmask 254976   ;;  %vm32_vm1 = vcmask 1042416   ;;  %vm34_vm2 = vcmask 271616   ;;  %v179_v1 = vmov 0.0  }
  0x10   :  { %31 = vst.msk [vmem:[#allocation2 + $0x2] sm:$0x3] %vm30_vm0, %v29_v0  ;;  %s127_s1 = sld [smem:[#allocation4 + $0x1]]  ;;  %s129_s19 = sld [smem:[#allocation4 + $0x3]]  ;;  %v180_v2 = vmov 1983009808   ;;  %v61_v4 = vlaneseq  ;;  %v41_v21 = vstv %s232_s2 }
  0x11   :  { %33 = vst.msk [vmem:[#allocation2] sm:$0x3] %vm32_vm1, %v179_v1  ;;  %v59_v3 = vunpack.c.l.s4 %v180_v2  ;;  %s130_s20 = sld [smem:[#allocation4 + $0x4]]  ;;  %s128_s21 = sld [smem:[#allocation4 + $0x2]]  ;;  %vm50_vm3 = vcmask 1039360   ;;  %vm68_vm4 = vcmask 1031168  }
  0x12   :  { %35 = vst.msk [vmem:[#allocation2 + $0x2] sm:$0x3] %vm34_vm2, %v179_v1  ;;  %v62_v6 = vshrl.u32 %v61_v4, 7  ;;  %s181_s0 = smov 127   ;;  %s182_s22 = smov 125   ;;  %vm80_vm5 = vcmask 1022976  }
  0x13   :  { %v60_v5 = vunpack.c.0.s8 %v59_v3  ;;  %s183_s23 = smov 126   ;;  %s184_s24 = smov 124   ;;  %vm91_vm6 = vcmask 1014784   ;;  %vm108_vm7 = vcmask 15360  }
  0x14   :  { %s36_s25 = sld [smem:[#allocation4]]  ;;  %s185_s2 = smov 2  }
  0x15   :  { %v63_v14 = vsub.s32 %v60_v5, %v62_v6  ;;  %s186_s28 = smov [#allocation7]  }
  0x16   :  { %v44_v7 = vstv %s127_s1  ;;  %v74_v8 = vstv %s129_s19  ;;  %s118_s29 = sshll.u32 %s186_s28, 4  ;;  %s119_s29 = int_to_ptr.vmem [resolvable:$true] %s118_s29 }
  0x17   :  { %v85_v11 = vstv %s130_s20  ;;  %v55_v15 = vstv %s128_s21  ;;  %s152_s30 = scalar_lea.vmem %s119_s29, 32  ;;  %p157_p6 = scmp.lt.s32.totalorder %s119_s29, %s119_s29 }
  0x18   :  { %v56_v17 = vmul.f32 %v55_v15, %v29_v0  ;;  %p153_p5 = scmp.ne.s32.totalorder %s119_s29, %s152_s30  ;;  %p158_p7 = scmp.lt.s32.totalorder %s152_s30, %s152_s30 }
  0x19   :  { %v37_v9 = vld [vmem:[#allocation2] sm:$0xf] }
  0x1a   :  { %v73_v10 = vld [vmem:[#allocation2 + $0x2] sm:$0x3]  ;;  %v45_v12 = vmul.f32 %v44_v7, %v37_v9  ;;  %v64_v18 = vrot.slane %v56_v17, %v63_v14  ;;  %v38_v19 = vstv %s36_s25  ;;  %p159_p8 = por %p158_p7, %p157_p6 }
  0x1b   :  { %v75_v13 = vmul.f32 %v74_v8, %v73_v10  ;;  %v86_v16 = vmul.f32 %v85_v11, %v73_v10  ;;  %v39_v20 = vmul.f32 %v38_v19, %v37_v9 }
  0x1c   :  { %47 = vrot.lane.b32.xlu0 %v45_v12, %s181_s0  ;;  %p160_p9 = pnand %p159_p8, %p153_p5 }
  0x1d   :  { %77 = vrot.lane.b32.xlu1 %v75_v13, %s182_s22  ;;  %v42_v25 = vadd.f32 %v41_v21, %v39_v20 }
  0x20   :  { %65 = vrot.lane.b32.xlu0 %v64_v18, %s183_s23 }
  0x21   :  { %88 = vrot.lane.b32.xlu1 %v86_v16, %s184_s24 }
  0x8e   :  { %v48_v22 = vpop.permute.xlu0 %47 }
  0x8f   :  { %v78_v23 = vpop.permute.xlu1 %77  ;;  %v49_v24 = vrot.slane %v48_v22, 2 }
  0x90   :  { %v79_v29 = vrot.slane %v78_v23, 6 }
  0x91   :  { %v51_v26 = vsel %vm50_vm3, %v48_v22, %v49_v24 }
  0x92   :  { %v66_v27 = vpop.permute.xlu0 %65  ;;  %v53_v31 = vadd.f32 %v51_v26, %v42_v25  ;;  %v81_v35 = vsel %vm80_vm5, %v79_v29, %v78_v23 }
  0x93   :  { %v89_v28 = vpop.permute.xlu1 %88  ;;  %v67_v30 = vrot.slane %v66_v27, 6 }
  0x94   :  { %v90_v33 = vrot.slane %v89_v28, 6 }
  0x95   :  { %v69_v32 = vsel %vm68_vm4, %v67_v30, %v66_v27 }
  0x96   :  { %v71_v34 = vadd.f32 %v69_v32, %v53_v31  ;;  %v92_v37 = vsel %vm91_vm6, %v90_v33, %v89_v28 }
  0x98   :  { %v83_v36 = vadd.f32 %v81_v35, %v71_v34 }
  0x9a   :  { %v94_v38 = vadd.f32 %v92_v37, %v83_v36 }
  0x9c   :  { %v102_v39 = vrot.slane %v94_v38, %v63_v14 }
  0x9e   :  { %104 = vrot.lane.b32.xlu0 %v102_v39, %s185_s2  ;;  %v103_v40 = vcombine.high %v102_v39, %v102_v39 }
  0xa0   :  { %106 = vrot.lane.b32.xlu1 %v103_v40, %s185_s2 }
 0x110   :  { %v105_v41 = vpop.permute.xlu0 %104 }
 0x112   :  { %v107_v42 = vpop.permute.xlu1 %106 }
 0x113   :  { %v109_v43 = vsel %vm108_vm7, %v105_v41, %v107_v42 }
 0x114   :  { %111 = vst.msk [vmem:[#allocation7] sm:$0x3] %vm30_vm0, %v109_v43 }
 0x115   :  { %163 = shalt.err (!%p160_p9)
}
 0x116   :  { %s164_s6 = scalar_lea.hbm %s233_s3, 32 }
 0x117   :  { %p165_p10 = scmp.ne.s32.totalorder %s233_s3, %s164_s6  ;;  %p168_p11 = scmp.lt.u32.totalorder %s164_s6, %s233_s3 }
 0x119   :  { %p170_p12 = pnand %p168_p11, %p165_p10 }
 0x11b   :  { %173 = shalt.err (!%p170_p12)
}
 0x11c   :  { %121 = dma.vmem_to_hbm [thread:$0]  %s119_s29, 32, %s233_s3, [#allocation5]  }
 0x11d   :  { %176 = dma.done.wait [#allocation5], 32  }
 0x11e   :  { %177 = vsyncadd [#allocation5], 4294967264 }
 0x11f   :  { %125 = vsyncpa [#allocation5], 1 }
 0x120   :  { %126 = vsyncpa [#allocation6], 1 }

</bundles_post_ra>
